<compile_context>
chip_gen: v7x
topology: tpu7x:2x2x1
jax: 0.10.0
libtpu: 0.0.40
codegen_flags: <defaults>
</compile_context>

<pallas_src>
import jax
import jax.numpy as jnp
from jax.experimental import pallas as pl
from jax.experimental.pallas import tpu as pltpu


# --------------------------------------------------------------------------
# Kernels
# --------------------------------------------------------------------------
def _attention_body(hidden_ref, enc_ref, w_h0_ref, w_h1_ref, w_enc_ref,
                    b_ref, v_ref, B, S, H):
    """Shared body: returns softmax attention weights (B, S) in f32."""
    # hid_proj = hidden[0] @ w_h0 + hidden[1] @ w_h1 + b      -> (B, H)
    hid_proj = (
        jnp.dot(hidden_ref[0], w_h0_ref[...], preferred_element_type=jnp.float32)
        + jnp.dot(hidden_ref[1], w_h1_ref[...], preferred_element_type=jnp.float32)
        + b_ref[...]
    )
    # enc_proj = enc @ w_enc                                  -> (B*S, H)
    enc_proj = jnp.dot(enc_ref[...], w_enc_ref[...],
                       preferred_element_type=jnp.float32)
    # energy (B, S, H): broadcast-add of the per-batch hidden projection.
    energy = jnp.tanh(enc_proj.reshape(B, S, H) + hid_proj[:, None, :])
    # v projection: contract H (lane axis) -> scores (B, S).
    scores = jnp.sum(energy * v_ref[...][None], axis=-1)
    # softmax over the sequence axis (dim=1 of the original module).
    m = jnp.max(scores, axis=-1, keepdims=True)
    e = jnp.exp(scores - m)
    return e / jnp.sum(e, axis=-1, keepdims=True)


def attention_kernel(hidden_ref, enc_ref, w_h0_ref, w_h1_ref, w_enc_ref,
                     b_ref, v_ref, out_ref):
    # hidden_ref: (2, B, H)  enc_ref: (B*S, 2H)  w_h0/w_h1: (H, H)
    # w_enc: (2H, H)  b_ref/v_ref: (1, H)  out_ref: (B, S)
    B, S = out_ref.shape
    H = v_ref.shape[-1]
    out_ref[...] = _attention_body(hidden_ref, enc_ref, w_h0_ref, w_h1_ref,
                                   w_enc_ref, b_ref, v_ref, B, S, H)


def attention_context_kernel(hidden_ref, enc_ref, w_h0_ref, w_h1_ref,
                             w_enc_ref, b_ref, v_ref, attn_ref, ctx_ref):
    # Fused variant: also produces context = attn @ encoder_output (B, 2H)
    # while encoder_output is still resident in VMEM.
    B, S = attn_ref.shape
    H = v_ref.shape[-1]
    attn = _attention_body(hidden_ref, enc_ref, w_h0_ref, w_h1_ref,
                           w_enc_ref, b_ref, v_ref, B, S, H)
    attn_ref[...] = attn
    enc3d = enc_ref[...].reshape(B, S, 2 * H)
    ctx_ref[...] = jnp.sum(attn[:, :, None] * enc3d, axis=1)


# --------------------------------------------------------------------------
# Init-time parameter preparation (NOT on the forward path)
# --------------------------------------------------------------------------
def prepare_attention_params(w_attn, b_attn, w_v):
    """w_attn: (H, 4H) torch layout, b_attn: (H,), w_v: (1, H).

    Splits the transposed weight so the kernel needs no lane-axis concats:
      columns [0:H)    of w_attn act on hidden[0]   -> w_h0 (H, H)
      columns [H:2H)   of w_attn act on hidden[1]   -> w_h1 (H, H)
      columns [2H:4H)  of w_attn act on enc          -> w_enc (2H, H)
    """
    H = w_attn.shape[0]
    w_t = jnp.transpose(w_attn)                       # (4H, H)
    w_h0 = w_t[0:H]                                   # (H, H)
    w_h1 = w_t[H:2 * H]                               # (H, H)
    w_enc = w_t[2 * H:4 * H]                          # (2H, H)
    return w_h0, w_h1, w_enc, b_attn.reshape(1, H), w_v.reshape(1, H)


# --------------------------------------------------------------------------
# Wrappers
# --------------------------------------------------------------------------
def _cost_estimate(B, S, H):
    flops = 4 * B * H * H + 4 * B * S * H * H + 2 * B * S * H   # matmuls + v-proj
    transcendentals = B * S * (H + 1)                           # tanh + exp
    bytes_in = 4 * (2 * B * H + B * S * 2 * H + 4 * H * H + 2 * H)
    bytes_out = 4 * (B * S + B * 2 * H)
    return pl.CostEstimate(flops=flops, transcendentals=transcendentals,
                           bytes_accessed=bytes_in + bytes_out)


def attention_layer(hidden, encoder_output, w_h0, w_h1, w_enc, b2, v2):
    """Module-faithful forward: (2,B,H), (B,S,2H) -> (B,S) softmax weights."""
    two, B, H = hidden.shape
    assert two == 2
    _, S, twoH = encoder_output.shape
    assert twoH == 2 * H

    enc2d = encoder_output.reshape(B * S, twoH)        # contiguous -> free

    vmem = pl.BlockSpec(memory_space=pltpu.MemorySpace.VMEM)
    return pl.pallas_call(
        attention_kernel,
        out_shape=jax.ShapeDtypeStruct((B, S), jnp.float32),
        in_specs=[vmem] * 7,
        out_specs=vmem,
        cost_estimate=_cost_estimate(B, S, H),
    )(hidden, enc2d, w_h0, w_h1, w_enc, b2, v2)


def attention_layer_with_context(hidden, encoder_output, w_h0, w_h1, w_enc,
                                 b2, v2):
    """Fused variant: returns (attn (B,S), context (B,2H)) in one launch."""
    two, B, H = hidden.shape
    assert two == 2
    _, S, twoH = encoder_output.shape
    assert twoH == 2 * H

    enc2d = encoder_output.reshape(B * S, twoH)

    vmem = pl.BlockSpec(memory_space=pltpu.MemorySpace.VMEM)
    return pl.pallas_call(
        attention_context_kernel,
        out_shape=(jax.ShapeDtypeStruct((B, S), jnp.float32),
                   jax.ShapeDtypeStruct((B, twoH), jnp.float32)),
        in_specs=[vmem] * 7,
        out_specs=(vmem, vmem),
        cost_estimate=_cost_estimate(B, S, H),
    )(hidden, enc2d, w_h0, w_h1, w_enc, b2, v2)


# --------------------------------------------------------------------------
# Pure-JAX reference (mirror of the PyTorch forward)
# --------------------------------------------------------------------------
def reference(hidden, encoder_output, w_attn, b_attn, w_v):
    S = encoder_output.shape[1]
    hid = jnp.concatenate([hidden[0], hidden[1]], axis=1)            # (B, 2H)
    hid_rep = jnp.repeat(hid[:, None, :], S, axis=1)                 # (B, S, 2H)
    x = jnp.concatenate([hid_rep, encoder_output], axis=2)           # (B, S, 4H)
    energy = jnp.tanh(x @ w_attn.T + b_attn)                         # (B, S, H)
    attn = (energy @ w_v.T)[..., 0]                                  # (B, S)
    return jax.nn.softmax(attn, axis=1)


if __name__ == "__main__":
    H = 32      # hidden_size
    B = 2       # batch
    S = 8       # max_length (encoder sequence length)

    key = jax.random.PRNGKey(0)
    k_hid, k_enc, k_attn, k_v = jax.random.split(key, 4)

    # Inputs
    hidden = jax.random.normal(k_hid, (2, B, H), dtype=jnp.float32)
    encoder_output = jax.random.normal(k_enc, (B, S, 2 * H), dtype=jnp.float32)

    # Parameters (deterministic xavier-uniform, zero bias — as in init_layer)
    bound_attn = (6.0 / (4 * H + H)) ** 0.5
    w_attn = jax.random.uniform(k_attn, (H, 4 * H), minval=-bound_attn,
                                maxval=bound_attn, dtype=jnp.float32)
    b_attn = jnp.zeros((H,), dtype=jnp.float32)
    bound_v = (6.0 / (H + 1)) ** 0.5
    w_v = jax.random.uniform(k_v, (1, H), minval=-bound_v, maxval=bound_v,
                             dtype=jnp.float32)

    # Hoisted (init-time) parameter preparation — done once, not per call.
    params = prepare_attention_params(w_attn, b_attn, w_v)
    params = jax.block_until_ready(params)
    w_h0, w_h1, w_enc, b2, v2 = params

    # --- module-faithful kernel -------------------------------------------
    out = attention_layer(hidden, encoder_output, w_h0, w_h1, w_enc, b2, v2)
    out = jax.block_until_ready(out)

    ref_attn = reference(hidden, encoder_output, w_attn, b_attn, w_v)
    assert out.shape == (B, S)
    assert jnp.allclose(out, ref_attn, atol=1e-5, rtol=1e-5), "attn mismatch"
    assert jnp.allclose(jnp.sum(out, axis=1), 1.0, atol=1e-5)

    # --- fused attn + context kernel (review item 1) ----------------------
    attn_f, ctx_f = attention_layer_with_context(
        hidden, encoder_output, w_h0, w_h1, w_enc, b2, v2)
    attn_f, ctx_f = jax.block_until_ready((attn_f, ctx_f))

    ref_ctx = jnp.einsum('bs,bsd->bd', ref_attn, encoder_output)
    assert attn_f.shape == (B, S) and ctx_f.shape == (B, 2 * H)
    assert jnp.allclose(attn_f, ref_attn, atol=1e-5, rtol=1e-5), "fused attn mismatch"
    assert jnp.allclose(ctx_f, ref_ctx, atol=1e-5, rtol=1e-5), "context mismatch"

    print("KERNEL_OK")
</pallas_src>

<mosaic_0001>
module attributes {stable_mosaic.version = 11 : i64} {
  func.func @attention_kernel(%arg0: memref<2x2x32xf32, #tpu.memory_space<vmem>>, %arg1: memref<16x64xf32, #tpu.memory_space<vmem>>, %arg2: memref<32x32xf32, #tpu.memory_space<vmem>>, %arg3: memref<32x32xf32, #tpu.memory_space<vmem>>, %arg4: memref<64x32xf32, #tpu.memory_space<vmem>>, %arg5: memref<1x32xf32, #tpu.memory_space<vmem>>, %arg6: memref<1x32xf32, #tpu.memory_space<vmem>>, %arg7: memref<2x8xf32, #tpu.memory_space<vmem>>) attributes {dimension_semantics = [], scalar_prefetch = 0 : i64, scratch_operands = 0 : i64, tpu.core_type = #tpu.core_type<tc>} {
    %c0 = arith.constant 0 : index
    %c0_0 = arith.constant 0 : index
    %c0_1 = arith.constant 0 : index
    %0 = vector.load %arg0[%c0, %c0_0, %c0_1] : memref<2x2x32xf32, #tpu.memory_space<vmem>>, vector<1x2x32xf32>
    %1 = vector.shape_cast %0 : vector<1x2x32xf32> to vector<2x32xf32>
    %c0_2 = arith.constant 0 : index
    %c0_3 = arith.constant 0 : index
    %2 = vector.load %arg2[%c0_2, %c0_3] : memref<32x32xf32, #tpu.memory_space<vmem>>, vector<32x32xf32>
    %cst = arith.constant dense<0.000000e+00> : vector<2x32xf32>
    %3 = tpu.matmul %1, %2, %cst {dimension_numbers = #tpu.dot_dimension_numbers<[1], [0], [0], [1], [0, 0, 1, 1], [], []>} : vector<2x32xf32>, vector<32x32xf32>, vector<2x32xf32> -> vector<2x32xf32>
    %c1 = arith.constant 1 : index
    %c0_4 = arith.constant 0 : index
    %c0_5 = arith.constant 0 : index
    %4 = vector.load %arg0[%c1, %c0_4, %c0_5] : memref<2x2x32xf32, #tpu.memory_space<vmem>>, vector<1x2x32xf32>
    %5 = vector.shape_cast %4 : vector<1x2x32xf32> to vector<2x32xf32>
    %c0_6 = arith.constant 0 : index
    %c0_7 = arith.constant 0 : index
    %6 = vector.load %arg3[%c0_6, %c0_7] : memref<32x32xf32, #tpu.memory_space<vmem>>, vector<32x32xf32>
    %cst_8 = arith.constant dense<0.000000e+00> : vector<2x32xf32>
    %7 = tpu.matmul %5, %6, %cst_8 {dimension_numbers = #tpu.dot_dimension_numbers<[1], [0], [0], [1], [0, 0, 1, 1], [], []>} : vector<2x32xf32>, vector<32x32xf32>, vector<2x32xf32> -> vector<2x32xf32>
    %8 = arith.addf %3, %7 : vector<2x32xf32>
    %c0_9 = arith.constant 0 : index
    %c0_10 = arith.constant 0 : index
    %9 = vector.load %arg5[%c0_9, %c0_10] : memref<1x32xf32, #tpu.memory_space<vmem>>, vector<1x32xf32>
    %10 = vector.broadcast %9 : vector<1x32xf32> to vector<2x32xf32>
    %11 = arith.addf %8, %10 : vector<2x32xf32>
    %c0_11 = arith.constant 0 : index
    %c0_12 = arith.constant 0 : index
    %12 = vector.load %arg1[%c0_11, %c0_12] : memref<16x64xf32, #tpu.memory_space<vmem>>, vector<16x64xf32>
    %c0_13 = arith.constant 0 : index
    %c0_14 = arith.constant 0 : index
    %13 = vector.load %arg4[%c0_13, %c0_14] : memref<64x32xf32, #tpu.memory_space<vmem>>, vector<64x32xf32>
    %cst_15 = arith.constant dense<0.000000e+00> : vector<16x32xf32>
    %14 = tpu.matmul %12, %13, %cst_15 {dimension_numbers = #tpu.dot_dimension_numbers<[1], [0], [0], [1], [0, 0, 1, 1], [], []>} : vector<16x64xf32>, vector<64x32xf32>, vector<16x32xf32> -> vector<16x32xf32>
    %15 = vector.shape_cast %14 : vector<16x32xf32> to vector<2x8x32xf32>
    %16 = vector.shape_cast %11 : vector<2x32xf32> to vector<2x1x32xf32>
    %17 = vector.broadcast %16 : vector<2x1x32xf32> to vector<2x8x32xf32>
    %18 = arith.addf %15, %17 : vector<2x8x32xf32>
    %19 = math.tanh %18 : vector<2x8x32xf32>
    %c0_16 = arith.constant 0 : index
    %c0_17 = arith.constant 0 : index
    %20 = vector.load %arg6[%c0_16, %c0_17] : memref<1x32xf32, #tpu.memory_space<vmem>>, vector<1x32xf32>
    %21 = vector.shape_cast %20 : vector<1x32xf32> to vector<1x1x32xf32>
    %22 = vector.broadcast %21 : vector<1x1x32xf32> to vector<2x8x32xf32>
    %23 = arith.mulf %19, %22 : vector<2x8x32xf32>
    %cst_18 = arith.constant dense<0.000000e+00> : vector<2x8xf32>
    %24 = vector.multi_reduction <add>, %23, %cst_18 [2] : vector<2x8x32xf32> to vector<2x8xf32>
    %cst_19 = arith.constant dense<0xFF800000> : vector<2xf32>
    %25 = vector.multi_reduction <maximumf>, %24, %cst_19 [1] : vector<2x8xf32> to vector<2xf32>
    %26 = vector.shape_cast %25 : vector<2xf32> to vector<2x1xf32>
    %27 = vector.broadcast %26 : vector<2x1xf32> to vector<2x8xf32>
    %28 = arith.subf %24, %27 : vector<2x8xf32>
    %29 = math.exp %28 : vector<2x8xf32>
    %cst_20 = arith.constant dense<0.000000e+00> : vector<2xf32>
    %30 = vector.multi_reduction <add>, %29, %cst_20 [1] : vector<2x8xf32> to vector<2xf32>
    %31 = vector.shape_cast %30 : vector<2xf32> to vector<2x1xf32>
    %32 = vector.broadcast %31 : vector<2x1xf32> to vector<2x8xf32>
    %33 = arith.divf %29, %32 : vector<2x8xf32>
    %c0_21 = arith.constant 0 : index
    %c0_22 = arith.constant 0 : index
    %34 = vector.load %arg7[%c0_21, %c0_22] : memref<2x8xf32, #tpu.memory_space<vmem>>, vector<2x8xf32>
    tpu.vector_store %arg7[%c0_21, %c0_22], %33 {strides = array<i32>} : memref<2x8xf32, #tpu.memory_space<vmem>>, vector<2x8xf32>,
    return
  }
}

</mosaic_0001>

<bundles_post_ra>
// kernel: tpu_custom_call.1
= control target key start
LH: loop header
LB: loop body
LE: loop exit
PB: predicated region body
PF: predicated region fallthrough
CT: control target
= control target key end

     0   :  { %v582_v3 = vmov 0.0|0.0   ;;  %vm583_vm0 = vmmov 0   ;;  %v584_v6 = vmov 0.0   ;;  %vm203_vm1 = vcmask 523264   ;;  %s726_s0 = inlined_call_operand.vmem [shape: f32[2,2,32], index: 0, kind: input, shape index: {}]   ;;  %s727_s1 = inlined_call_operand.vmem [shape: f32[16,64], index: 1, kind: input, shape index: {}]   ;;  %s728_s2 = inlined_call_operand.vmem [shape: f32[32,32], index: 2, kind: input, shape index: {}]   ;;  %s729_s3 = inlined_call_operand.vmem [shape: f32[32,32], index: 3, kind: input, shape index: {}]   ;;  %s730_s4 = inlined_call_operand.vmem [shape: f32[64,32], index: 4, kind: input, shape index: {}]   ;;  %s731_s5 = inlined_call_operand.vmem [shape: f32[1,32], index: 5, kind: input, shape index: {}]   ;;  %s732_s6 = inlined_call_operand.vmem [shape: f32[1,32], index: 6, kind: input, shape index: {}]   ;;  %s733_s7 = inlined_call_operand.hbm [shape: f32[2,8], index: 7, kind: output, shape index: {}]  }
   0x1   :  { %v34_v0 = vld [vmem:[%s729_s3] sm:$0xff]  ;;  %v35_v1 = vld [vmem:[%s729_s3 + $0x8] sm:$0xff]  ;;  %v36_v2 = vld [vmem:[%s729_s3 + $0x10] sm:$0xff]  ;;  %510 = vmatprep.subr.bf16.mxu1 %v582_v3  ;;  %477 = vmatprep.mubr.msk.f32.mxu1 %vm583_vm0, %v584_v6 }
   0x2   :  { %v511_v4 = vpack.c.bf16 %v35_v1, %v34_v0  ;;  %v37_v5 = vld [vmem:[%s729_s3 + $0x18] sm:$0xff]  ;;  %v195_v7 = vld [vmem:[%s730_s4] sm:$0xff]  ;;  %v196_v8 = vld [vmem:[%s730_s4 + $0x8] sm:$0xff] }
   0x3   :  { %v514_v9 = vpack.c.bf16 %v37_v5, %v36_v2  ;;  %v522_v10 = vpack.c.bf16 %v196_v8, %v195_v7  ;;  %v197_v11 = vld [vmem:[%s730_s4 + $0x10] sm:$0xff]  ;;  %v198_v12 = vld [vmem:[%s730_s4 + $0x18] sm:$0xff]  ;;  %v28_v13 = vld [vmem:[%s728_s2] sm:$0xff] }
   0x4   :  { %512 = vmatpush3.bf16.msra.mxu1 %v511_v4  ;;  %v29_v14 = vld [vmem:[%s728_s2 + $0x8] sm:$0xff]  ;;  %v526_v15 = vpack.c.bf16 %v198_v12, %v197_v11  ;;  %v199_v16 = vld [vmem:[%s730_s4 + $0x20] sm:$0xff] }
   0x5   :  { %513 = vmatprep.subr.bf16.mxu1 %v582_v3  ;;  %523 = vmatprep.subr.bf16.mxu0 %v522_v10  ;;  %v200_v17 = vld [vmem:[%s730_s4 + $0x28] sm:$0xff]  ;;  %v193_v18 = vld [vmem:[%s727_s1] sm:$0xff] }
   0x6   :  { %525 = vmatpush3.bf16.msra.mxu0 %v522_v10 }
   0x7   :  { %12 = vsyncpa [#allocation3], 0  ;;  %v442_v19 = vld [vmem:[%s726_s0 + $0x2] sm:$0x3]  ;;  %vm38_vm2 = vcmask 261120   ;;  %v517_v20 = vpack.c.bf16 %v29_v14, %v28_v13  ;;  %527 = vmatprep.subr.bf16.mxu0 %v526_v15  ;;  %v30_v21 = vld [vmem:[%s728_s2 + $0x10] sm:$0xff]  ;;  %v530_v23 = vpack.c.bf16 %v200_v17, %v199_v16  ;;  %507 = vmatprep.mubr.msk.f32.mxu0 %vm203_vm1, %v193_v18  ;;  %v289_v34 = vlaneseq }
   0x8   :  { %515 = vmatpush3.bf16.msra.mxu1 %v514_v9  ;;  %v31_v22 = vld [vmem:[%s728_s2 + $0x18] sm:$0xff]  ;;  %v201_v24 = vld [vmem:[%s730_s4 + $0x30] sm:$0xff]  ;;  %v27_v28 = vld [vmem:[%s726_s0] sm:$0x3]  ;;  %v585_v32 = vmov 1966171168  }
   0x9   :  { %516 = vmatprep.subr.bf16.mxu1 %v582_v3  ;;  %v202_v25 = vld [vmem:[%s730_s4 + $0x38] sm:$0xff]  ;;  %v520_v26 = vpack.c.bf16 %v31_v22, %v30_v21  ;;  %v194_v29 = vld [vmem:[%s727_s1 + $0x8] sm:$0xff]  ;;  %v287_v33 = vunpack.c.l.s4 %v585_v32  ;;  %v694_v36 = vshrl.u32 %v289_v34, 7  ;;  %v445_v38 = vld [vmem:[%s731_s5] ss:$0 sm:$0xff]  ;;  %v340_v61 = vand.u32 127, %v289_v34 }
   0xa   :  { %529 = vmatpush3.bf16.msra.mxu0 %v526_v15  ;;  %v534_v27 = vpack.c.bf16 %v202_v25, %v201_v24  ;;  %v448_v54 = vld [vmem:[%s732_s6] ss:$0 sm:$0xff]  ;;  %vm349_vm3 = vcmask 1041409   ;;  %vm352_vm4 = vcmask 58368   ;;  %v586_v5 = vmov 0   ;;  %s587_s6 = smov [#allocation2]  }
   0xb   :  { %478 = vmatmul.mubr.msk.f32.vlgmr.msra.gmra.mrb[0].mxu1 %vm38_vm2, %v442_v19  ;;  %531 = vmatprep.subr.bf16.mxu0 %v530_v23  ;;  %v288_v35 = vunpack.c.0.s8 %v287_v33  ;;  %v310_v46 = vsub.s32 0, %v694_v36  ;;  %v343_v63 = vsub.s32 %v340_v61, %v694_v36  ;;  %s434_s15 = sshll.u32 %s587_s6, 4  ;;  %s435_s15 = int_to_ptr.vmem [resolvable:$true] %s434_s15 }
   0xc   :  { %518 = vmatpush3.bf16.msra.mxu1 %v517_v20  ;;  %488 = vmatprep.mubr.msk.f32.mxu1 %vm583_vm0, %v584_v6  ;;  %v363_v6 = vsub.s32 1, %v694_v36  ;;  %s558_s16 = scalar_lea.vmem %s435_s15, 32  ;;  %p563_p1 = scmp.lt.s32.totalorder %s435_s15, %s435_s15 }
   0xd   :  { %519 = vmatprep.subr.bf16.mxu1 %v582_v3  ;;  %v291_v40 = vsub.s32 %v288_v35, %v694_v36  ;;  %545 = vset.pattern.permute.xlu0 %v586_v5  ;;  %p559_p0 = scmp.ne.s32.totalorder %s435_s15, %s558_s16  ;;  %p564_p2 = scmp.lt.s32.totalorder %s558_s16, %s558_s16 }
   0xe   :  { %533 = vmatpush3.bf16.msra.mxu0 %v530_v23  ;;  %544 = vset.pattern.permute.xlu1 %v586_v5 }
   0xf   :  { %535 = vmatprep.subr.bf16.mxu0 %v534_v27  ;;  %p565_p3 = por %p564_p2, %p563_p1 }
  0x10   :  { %521 = vmatpush3.bf16.msra.mxu1 %v520_v26 }
  0x11   :  { %p566_p4 = pnand %p565_p3, %p559_p0 }
  0x12   :  { %537 = vmatpush3.bf16.msra.mxu0 %v534_v27 }
  0x13   :  { %489 = vmatmul.mubr.msk.f32.vlgmr.msra.gmra.mrb[2].mxu1 %vm38_vm2, %v27_v28 }
  0x15   :  { %508 = vmatmul.mubr.msk.f32.vlgmr.msra.gmra.mrb[0].mxu0 %vm203_vm1, %v194_v29 }
  0xde   :  { %v108_v30 = vpop.f32.mrb[0].mxu1 }
  0xdf   :  { %v479_v31 = vpop.f32.mrb[1].mxu1 }
  0xe6   :  { %v181_v37 = vpop.f32.mrb[2].mxu1 }
  0xe7   :  { %v182_v39 = vadd.f32 %v181_v37, %v108_v30  ;;  %v490_v41 = vpop.f32.mrb[3].mxu1 }
  0xe8   :  { %v509_v43 = vpop.f32.mrb[0].mxu0 }
  0xe9   :  { %v192_v42 = vadd.f32 %v445_v38, %v182_v39  ;;  %v276_v44 = vpop.f32.mrb[1].mxu0 }
  0xeb   :  { %v292_v45 = vrot.slane %v192_v42, %v291_v40 }
  0xed   :  { %v293_v47 = vcombine.high %v292_v45, %v292_v45  ;;  %v300_v48 = vrot.slane %v292_v45, %v291_v40 }
  0xef   :  { %v307_v49 = vrot.slane %v293_v47, %v291_v40  ;;  %v311_v50 = vrot.slane %v300_v48, %v310_v46 }
  0xf1   :  { %v315_v51 = vrot.slane %v307_v49, %v310_v46  ;;  %v318_v52 = vadd.f32 %v311_v50, %v276_v44 }
  0xf3   :  { %v319_v53 = vadd.f32 %v509_v43, %v315_v51  ;;  %546 = vtanh.f32 %v318_v52 }
  0xf5   :  { %548 = vtanh.f32 %v319_v53 }
  0xfd   :  { %v547_v55 = vpop.eup %546 }
  0xfe   :  { %v329_v56 = vmul.f32 %v547_v55, %v448_v54 }
  0xff   :  { %v549_v57 = vpop.eup %548 }
 0x100   :  { %v331_v58 = vsel %vm38_vm2, %v329_v56, 0.0  ;;  %v330_v59 = vmul.f32 %v549_v57, %v448_v54 }
 0x101   :  { %332 = vadd.xlane.f32.xlu0 %v331_v58 }
 0x102   :  { %v334_v60 = vsel %vm38_vm2, %v330_v59, 0.0 }
 0x105   :  { %335 = vadd.xlane.f32.xlu0 %v334_v60 }
 0x18e   :  { %v333_v62 = vpop.xlane.xlu0 %332 }
 0x18f   :  { %v344_v1 = vrot.slane %v333_v62, %v343_v63 }
 0x192   :  { %v336_v0 = vpop.xlane.xlu0 %335 }
 0x193   :  { %v348_v2 = vrot.slane %v336_v0, %v343_v63 }
 0x195   :  { %v350_v3 = vsel %vm349_vm3, %v348_v2, %v344_v1 }
 0x196   :  { %v353_v4 = vsel %vm352_vm4, %v350_v3, -inf }
 0x197   :  { %354 = vmax.xlane.f32.xlu1 %v353_v4 }
 0x224   :  { %v355_v7 = vpop.xlane.xlu1 %354 }
 0x225   :  { %v360_v8 = vrot.slane %v355_v7, %v310_v46  ;;  %v364_v9 = vrot.slane %v355_v7, %v363_v6 }
 0x227   :  { %v367_v10 = vsub.f32 %v333_v62, %v360_v8  ;;  %v368_v11 = vsub.f32 %v336_v0, %v364_v9 }
 0x229   :  { %v369_v12 = vmul.f32 1.442695, %v367_v10  ;;  %v371_v13 = vmul.f32 1.442695, %v368_v11 }
 0x22b   :  { %550 = vpow2.f32 %v369_v12 }
 0x22c   :  { %552 = vpow2.f32 %v371_v13 }
 0x235   :  { %v551_v14 = vpop.eup %550 }
 0x236   :  { %v553_v15 = vpop.eup %552  ;;  %376 = vperm.xlu1 %544, %v551_v14  }
 0x237   :  { %379 = vperm.xlu0 %545, %v553_v15  }
 0x2b5   :  { %v377_v16 = vpop.permute.xlu1 %376 }
 0x2b6   :  { %v380_v17 = vpop.permute.xlu0 %379  ;;  %v384_v18 = vrot.slane %v377_v16, %v343_v63 }
 0x2b7   :  { %v388_v19 = vrot.slane %v380_v17, %v343_v63 }
 0x2b9   :  { %v389_v20 = vsel %vm349_vm3, %v388_v19, %v384_v18 }
 0x2ba   :  { %v391_v21 = vsel %vm352_vm4, %v389_v20, 0.0 }
 0x2bb   :  { %392 = vadd.xlane.f32.xlu1 %v391_v21 }
 0x348   :  { %v393_v22 = vpop.xlane.xlu1 %392 }
 0x349   :  { %v398_v23 = vrot.slane %v393_v22, %v310_v46  ;;  %v402_v24 = vrot.slane %v393_v22, %v363_v6 }
 0x34b   :  { %554 = vrcp.f32 %v398_v23 }
 0x34c   :  { %556 = vrcp.f32 %v402_v24 }
 0x355   :  { %v555_v25 = vpop.eup %554 }
 0x356   :  { %v406_v26 = vmul.f32 %v555_v25, %v551_v14  ;;  %v557_v27 = vpop.eup %556 }
 0x357   :  { %v408_v28 = vmul.f32 %v557_v27, %v553_v15 }
 0x358   :  { %412 = vperm.xlu0 %545, %v406_v26  }
 0x35c   :  { %415 = vperm.xlu0 %545, %v408_v28  }
 0x3d7   :  { %v413_v29 = vpop.permute.xlu0 %412 }
 0x3d8   :  { %v420_v31 = vrot.slane %v413_v29, %v343_v63 }
 0x3db   :  { %v416_v30 = vpop.permute.xlu0 %415 }
 0x3dc   :  { %v424_v32 = vrot.slane %v416_v30, %v343_v63 }
 0x3de   :  { %v425_v33 = vsel %vm349_vm3, %v424_v32, %v420_v31 }
 0x3df   :  { %427 = vst.msk [vmem:[#allocation2] sm:$0x3] %vm352_vm4, %v425_v33 }
 0x3e0   :  { %569 = shalt.err (!%p566_p4)
}
 0x3e1   :  { %s570_s19 = scalar_lea.hbm %s733_s7, 32 }
 0x3e2   :  { %p571_p5 = scmp.ne.s32.totalorder %s733_s7, %s570_s19  ;;  %p574_p6 = scmp.lt.u32.totalorder %s570_s19, %s733_s7 }
 0x3e4   :  { %p576_p7 = pnand %p574_p6, %p571_p5 }
 0x3e6   :  { %579 = shalt.err (!%p576_p7)
}
 0x3e7   :  { %437 = dma.vmem_to_hbm [thread:$0]  %s435_s15, 32, %s733_s7, [#allocation3]  }
 0x3e8   :  { %580 = dma.done.wait [#allocation3], 32  }
 0x3e9   :  { %581 = vsyncadd [#allocation3], 4294967264 }
 0x3ea   :  { %441 = vsyncpa [#allocation3], 1 }

</bundles_post_ra>
